<compile_context>
chip_gen: v5e
topology: v5e:2x2
jax: 0.10.0
libtpu: 0.0.40
codegen_flags: <defaults>
</compile_context>

<pallas_src>
import functools

import jax
import jax.numpy as jnp
from jax.experimental import pallas as pl
from jax.experimental.pallas import tpu as pltpu

EPS = 1e-5
NEG_SLOPE = 0.01                       # PyTorch nn.LeakyReLU default
_VMEM_LIMIT = 32 * 1024 * 1024         # safe on v5e/v6e/v7x


def _round_up(n, m):
    return ((n + m - 1) // m) * m


def _leaky_relu(x):
    return jnp.where(x > 0, x, NEG_SLOPE * x)


def _bn_train(x, gamma, beta):
    # Training-mode BatchNorm1d: per-batch mean, biased variance, eps=1e-5.
    mean = jnp.mean(x, axis=0, keepdims=True)
    var = jnp.mean(jnp.square(x - mean), axis=0, keepdims=True)
    return (x - mean) * jax.lax.rsqrt(var + EPS) * gamma + beta


def _pack_head_params(g1, be1, w2, g2, be2, w3, b3):
    # All tiny head parameters in ONE (8,128) f32 tile (single DMA).
    p = jnp.zeros((8, 128), jnp.float32)
    p = p.at[0, :16].set(g1.reshape(16).astype(jnp.float32))   # BN(16) gamma
    p = p.at[1, :16].set(be1.reshape(16).astype(jnp.float32))  # BN(16) beta
    p = p.at[2, :16].set(w2.reshape(16).astype(jnp.float32))   # Linear(16,1) weight row
    p = p.at[3, :1].set(g2.reshape(1).astype(jnp.float32))     # BN(1) gamma
    p = p.at[4, :1].set(be2.reshape(1).astype(jnp.float32))    # BN(1) beta
    p = p.at[5, :10].set(w3.reshape(10).astype(jnp.float32))   # Linear(1,10) weight row
    p = p.at[6, :10].set(b3.reshape(10).astype(jnp.float32))   # Linear(1,10) bias
    return p


# ---------------------------------------------------------------------------
# Small-batch path: one fused, un-gridded kernel  x(B,784) -> out(B,10)
# ---------------------------------------------------------------------------
def _fused_kernel(x_ref, w1_ref, p_ref, o_ref):
    # Cast on-chip: x streams from HBM as f32 (no extra standalone cast pass).
    x = x_ref[...].astype(jnp.bfloat16)
    w1 = w1_ref[...].astype(jnp.bfloat16)
    h1 = jnp.dot(x, w1, preferred_element_type=jnp.float32)        # (B,16)

    g1 = p_ref[0:1, 0:16]
    be1 = p_ref[1:2, 0:16]
    w2 = p_ref[2:3, 0:16]
    g2 = p_ref[3:4, 0:1]
    be2 = p_ref[4:5, 0:1]
    w3 = p_ref[5:6, 0:10]
    b3 = p_ref[6:7, 0:10]

    # BN(16) training-mode (whole batch resident) + LeakyReLU
    m1 = jnp.mean(h1, axis=0, keepdims=True)
    v1 = jnp.mean(jnp.square(h1 - m1), axis=0, keepdims=True)
    a1 = _leaky_relu((h1 - m1) * jax.lax.rsqrt(v1 + EPS) * g1 + be1)

    # Linear(16,1) as a VPU row-reduce (N=1 on the MXU is waste); bias dropped.
    h2 = jnp.sum(a1 * w2, axis=-1, keepdims=True)                  # (B,1)

    m2 = jnp.mean(h2, axis=0, keepdims=True)
    v2 = jnp.mean(jnp.square(h2 - m2), axis=0, keepdims=True)
    a2 = _leaky_relu((h2 - m2) * jax.lax.rsqrt(v2 + EPS) * g2 + be2)

    # Linear(1,10): broadcast outer product.
    o_ref[...] = (a2 * w3 + b3).astype(o_ref.dtype)


def _forward_fused(x, w1, packed):
    B = x.shape[0]
    vmem = pl.BlockSpec(memory_space=pltpu.MemorySpace.VMEM)
    return pl.pallas_call(
        _fused_kernel,
        out_shape=jax.ShapeDtypeStruct((B, 10), jnp.float32),
        in_specs=[vmem, vmem, vmem],
        out_specs=vmem,
        compiler_params=pltpu.CompilerParams(vmem_limit_bytes=_VMEM_LIMIT),
    )(x, w1, packed)


# ---------------------------------------------------------------------------
# Large-batch path: 3 batch-tiled passes (no whole-batch VMEM residency)
# ---------------------------------------------------------------------------
def _pass1_kernel(x_ref, w1_ref, h1_ref, stats1_ref, *, batch, tile_b):
    i = pl.program_id(0)
    x = x_ref[...].astype(jnp.bfloat16)                 # on-chip cast
    w1 = w1_ref[...].astype(jnp.bfloat16)
    h1 = jnp.dot(x, w1, preferred_element_type=jnp.float32)        # (tile_b,16)
    h1_ref[...] = h1                                    # ragged last block is clipped

    # Mask rows past the true batch (ragged last tile) before reducing.
    rows = i * tile_b + jax.lax.broadcasted_iota(jnp.int32, h1.shape, 0)
    hm = jnp.where(rows < batch, h1, 0.0)

    @pl.when(i == 0)
    def _init():
        stats1_ref[...] = jnp.zeros_like(stats1_ref)

    stats1_ref[0:1, :] += jnp.sum(hm, axis=0, keepdims=True)       # sum
    stats1_ref[1:2, :] += jnp.sum(hm * hm, axis=0, keepdims=True)  # sum of squares


def _pass2_kernel(h1_ref, stats1_ref, p_ref, stats2_ref, *, batch, tile_b):
    i = pl.program_id(0)
    h1 = h1_ref[...]                                    # (tile_b,16) f32
    inv_b = 1.0 / batch
    m1 = stats1_ref[0:1, :] * inv_b
    v1 = stats1_ref[1:2, :] * inv_b - m1 * m1
    g1 = p_ref[0:1, 0:16]
    be1 = p_ref[1:2, 0:16]
    w2 = p_ref[2:3, 0:16]

    a1 = _leaky_relu((h1 - m1) * jax.lax.rsqrt(v1 + EPS) * g1 + be1)
    h2 = jnp.sum(a1 * w2, axis=-1, keepdims=True)       # (tile_b,1)

    rows = i * tile_b + jax.lax.broadcasted_iota(jnp.int32, h1.shape, 0)
    h2m = jnp.where(rows[:, 0:1] < batch, h2, 0.0)

    @pl.when(i == 0)
    def _init():
        stats2_ref[...] = jnp.zeros_like(stats2_ref)

    stats2_ref[0:1, :] += jnp.sum(h2m, axis=0, keepdims=True)
    stats2_ref[1:2, :] += jnp.sum(h2m * h2m, axis=0, keepdims=True)


def _pass3_kernel(h1_ref, stats1_ref, stats2_ref, p_ref, o_ref, *, batch):
    h1 = h1_ref[...]
    inv_b = 1.0 / batch
    m1 = stats1_ref[0:1, :] * inv_b
    v1 = stats1_ref[1:2, :] * inv_b - m1 * m1
    m2 = stats2_ref[0:1, :] * inv_b
    v2 = stats2_ref[1:2, :] * inv_b - m2 * m2

    g1 = p_ref[0:1, 0:16]
    be1 = p_ref[1:2, 0:16]
    w2 = p_ref[2:3, 0:16]
    g2 = p_ref[3:4, 0:1]
    be2 = p_ref[4:5, 0:1]
    w3 = p_ref[5:6, 0:10]
    b3 = p_ref[6:7, 0:10]

    a1 = _leaky_relu((h1 - m1) * jax.lax.rsqrt(v1 + EPS) * g1 + be1)
    h2 = jnp.sum(a1 * w2, axis=-1, keepdims=True)       # recompute (cheap VPU work)
    a2 = _leaky_relu((h2 - m2) * jax.lax.rsqrt(v2 + EPS) * g2 + be2)
    o_ref[...] = (a2 * w3 + b3).astype(o_ref.dtype)     # ragged last block is clipped


def _forward_gridded(x, w1, packed, *, tile_b, head_tile_b):
    B, D = x.shape
    n1 = pl.cdiv(B, tile_b)
    nh = pl.cdiv(B, head_tile_b)

    cparams_arb = pltpu.CompilerParams(
        dimension_semantics=("arbitrary",), vmem_limit_bytes=_VMEM_LIMIT)
    cparams_par = pltpu.CompilerParams(
        dimension_semantics=("parallel",), vmem_limit_bytes=_VMEM_LIMIT)

    # Pass 1: h1 = x @ W1 (streamed f32 x, on-chip bf16 cast) + BN(16) stats.
    h1, stats1 = pl.pallas_call(
        functools.partial(_pass1_kernel, batch=B, tile_b=tile_b),
        out_shape=(jax.ShapeDtypeStruct((B, 16), jnp.float32),
                   jax.ShapeDtypeStruct((2, 16), jnp.float32)),
        grid_spec=pltpu.PrefetchScalarGridSpec(
            num_scalar_prefetch=0,
            grid=(n1,),
            in_specs=[pl.BlockSpec((tile_b, D), lambda i: (i, 0)),   # streamed x tiles
                      pl.BlockSpec((D, 16), lambda i: (0, 0))],      # resident W1
            out_specs=(pl.BlockSpec((tile_b, 16), lambda i: (i, 0)),
                       pl.BlockSpec((2, 16), lambda i: (0, 0))),     # stats accumulator
        ),
        compiler_params=cparams_arb,
    )(x, w1)

    # Pass 2: BN(1) statistics of h2 = LeakyReLU(BN16(h1)) . w2.
    stats2 = pl.pallas_call(
        functools.partial(_pass2_kernel, batch=B, tile_b=head_tile_b),
        out_shape=jax.ShapeDtypeStruct((2, 1), jnp.float32),
        grid_spec=pltpu.PrefetchScalarGridSpec(
            num_scalar_prefetch=0,
            grid=(nh,),
            in_specs=[pl.BlockSpec((head_tile_b, 16), lambda i: (i, 0)),
                      pl.BlockSpec((2, 16), lambda i: (0, 0)),
                      pl.BlockSpec((8, 128), lambda i: (0, 0))],
            out_specs=pl.BlockSpec((2, 1), lambda i: (0, 0)),
        ),
        compiler_params=cparams_arb,
    )(h1, stats1, packed)

    # Pass 3: batch-tiled elementwise head ("parallel" -> both v7x TCs).
    return pl.pallas_call(
        functools.partial(_pass3_kernel, batch=B),
        out_shape=jax.ShapeDtypeStruct((B, 10), jnp.float32),
        grid_spec=pltpu.PrefetchScalarGridSpec(
            num_scalar_prefetch=0,
            grid=(nh,),
            in_specs=[pl.BlockSpec((head_tile_b, 16), lambda i: (i, 0)),
                      pl.BlockSpec((2, 16), lambda i: (0, 0)),
                      pl.BlockSpec((2, 1), lambda i: (0, 0)),
                      pl.BlockSpec((8, 128), lambda i: (0, 0))],
            out_specs=pl.BlockSpec((head_tile_b, 10), lambda i: (i, 0)),
        ),
        compiler_params=cparams_par,
    )(h1, stats1, stats2, packed)


# ---------------------------------------------------------------------------
# Wrapper
# ---------------------------------------------------------------------------
def model13_forward(x_nchw, params, *, tile_b=2048, head_tile_b=None,
                    fuse_max_b=2048):
    (w1, g1, be1, w2, g2, be2, w3, b3) = params

    B = x_nchw.shape[0]
    # PyTorch training-mode BatchNorm1d rejects batch size 1.
    assert B >= 2, "training-mode BatchNorm1d requires batch size >= 2"

    # Flatten like x.view(B, -1).  NOTE: no wrapper-side dtype cast and no
    # jnp.pad — both were full extra HBM passes over the dominant operand.
    x = x_nchw.reshape(B, -1)

    packed = _pack_head_params(g1, be1, w2, g2, be2, w3, b3)

    if B <= fuse_max_b:
        # Small / MNIST-sized batch: one fused pallas_call, no h1 roundtrip.
        return _forward_fused(x, w1, packed)

    b8 = _round_up(B, 8)
    tile_b = max(8, min((tile_b // 8) * 8, b8))
    if head_tile_b is None:
        head_tile_b = 8 * tile_b          # head passes stream far fewer bytes/row
    head_tile_b = max(8, min((head_tile_b // 8) * 8, b8))
    return _forward_gridded(x, w1, packed, tile_b=tile_b, head_tile_b=head_tile_b)


def init_params(key):
    """Parameters matching model_13's shapes.

    Linear weights are stored pre-transposed / as rows so the kernels compute
    x @ W directly.  The biases of Linear(784,16) and Linear(16,1) are
    omitted: each is immediately followed by a training-mode BatchNorm whose
    mean subtraction cancels a constant per-feature bias exactly.
    """
    ks = jax.random.split(key, 8)

    def uniform(k, shape, fan_in):
        bound = fan_in ** -0.5
        return jax.random.uniform(k, shape, jnp.float32, -bound, bound)

    w1 = uniform(ks[0], (28 * 28, 16), 28 * 28)   # Linear(784,16).weight^T
    w2 = uniform(ks[1], (1, 16), 16)              # Linear(16,1).weight (row)
    w3 = uniform(ks[2], (1, 10), 1)               # Linear(1,10).weight^T (row)
    b3 = uniform(ks[3], (10,), 1)
    # Non-trivial BN affine params so the kernel's BN path is actually tested.
    g1 = 1.0 + 0.1 * jax.random.normal(ks[4], (16,), jnp.float32)
    be1 = 0.1 * jax.random.normal(ks[5], (16,), jnp.float32)
    g2 = 1.0 + 0.1 * jax.random.normal(ks[6], (1,), jnp.float32)
    be2 = 0.1 * jax.random.normal(ks[7], (1,), jnp.float32)
    return (w1, g1, be1, w2, g2, be2, w3, b3)


def model13_reference(x_nchw, params):
    """Pure-JAX reference (same bf16 MXU path for the first matmul)."""
    (w1, g1, be1, w2, g2, be2, w3, b3) = params
    B = x_nchw.shape[0]
    x = x_nchw.reshape(B, -1)
    h1 = jnp.dot(x.astype(jnp.bfloat16), w1.astype(jnp.bfloat16),
                 preferred_element_type=jnp.float32)
    a1 = _leaky_relu(_bn_train(h1, g1[None, :], be1[None, :]))
    h2 = jnp.sum(a1 * w2.reshape(1, 16), axis=-1, keepdims=True)
    a2 = _leaky_relu(_bn_train(h2, g2[None, :], be2[None, :]))
    return a2 * w3.reshape(1, 10) + b3[None, :]


if __name__ == "__main__":
    key = jax.random.PRNGKey(0)
    k_x1, k_x2, k_p = jax.random.split(key, 3)
    params = init_params(k_p)

    # 1) Small batch -> single fused kernel (no intermediate HBM roundtrip).
    B1 = 16
    x1 = jax.random.normal(k_x1, (B1, 1, 28, 28), jnp.float32)   # NCHW like MNIST
    out1 = model13_forward(x1, params)
    jax.block_until_ready(out1)
    assert out1.shape == (B1, 10) and out1.dtype == jnp.float32
    ref1 = model13_reference(x1, params)
    assert jnp.allclose(out1, ref1, atol=5e-3, rtol=5e-3), \
        float(jnp.max(jnp.abs(out1 - ref1)))

    # 2) Moderate batch with a ragged last tile -> exercises the gridded
    #    3-pass large-batch path (cdiv grid + in-kernel row masks).
    B2 = 300
    x2 = jax.random.normal(k_x2, (B2, 1, 28, 28), jnp.float32)
    out2 = model13_forward(x2, params, tile_b=128, head_tile_b=128, fuse_max_b=0)
    jax.block_until_ready(out2)
    assert out2.shape == (B2, 10) and out2.dtype == jnp.float32
    ref2 = model13_reference(x2, params)
    assert jnp.allclose(out2, ref2, atol=5e-3, rtol=5e-3), \
        float(jnp.max(jnp.abs(out2 - ref2)))

    print("KERNEL_OK")
</pallas_src>

<mosaic_0001>
module attributes {stable_mosaic.version = 11 : i64} {
  func.func @_fused_kernel(%arg0: memref<16x784xf32, #tpu.memory_space<vmem>>, %arg1: memref<784x16xf32, #tpu.memory_space<vmem>>, %arg2: memref<8x128xf32, #tpu.memory_space<vmem>>, %arg3: memref<16x10xf32, #tpu.memory_space<vmem>>) attributes {dimension_semantics = [], scalar_prefetch = 0 : i64, scratch_operands = 0 : i64, tpu.core_type = #tpu.core_type<tc>} {
    %c0 = arith.constant 0 : index
    %c0_0 = arith.constant 0 : index
    %0 = vector.load %arg0[%c0, %c0_0] : memref<16x784xf32, #tpu.memory_space<vmem>>, vector<16x784xf32>
    %1 = arith.truncf %0 : vector<16x784xf32> to vector<16x784xbf16>
    %c0_1 = arith.constant 0 : index
    %c0_2 = arith.constant 0 : index
    %2 = vector.load %arg1[%c0_1, %c0_2] : memref<784x16xf32, #tpu.memory_space<vmem>>, vector<784x16xf32>
    %3 = arith.truncf %2 : vector<784x16xf32> to vector<784x16xbf16>
    %cst = arith.constant dense<0.000000e+00> : vector<16x16xf32>
    %4 = tpu.matmul %1, %3, %cst {dimension_numbers = #tpu.dot_dimension_numbers<[1], [0], [0], [1], [0, 0, 1, 1], [], []>} : vector<16x784xbf16>, vector<784x16xbf16>, vector<16x16xf32> -> vector<16x16xf32>
    %c0_3 = arith.constant 0 : index
    %c0_4 = arith.constant 0 : index
    %5 = vector.load %arg2[%c0_3, %c0_4] : memref<8x128xf32, #tpu.memory_space<vmem>>, vector<1x16xf32>
    %c1 = arith.constant 1 : index
    %c0_5 = arith.constant 0 : index
    %6 = vector.load %arg2[%c1, %c0_5] : memref<8x128xf32, #tpu.memory_space<vmem>>, vector<1x16xf32>
    %c2 = arith.constant 2 : index
    %c0_6 = arith.constant 0 : index
    %7 = vector.load %arg2[%c2, %c0_6] : memref<8x128xf32, #tpu.memory_space<vmem>>, vector<1x16xf32>
    %c3 = arith.constant 3 : index
    %c0_7 = arith.constant 0 : index
    %8 = vector.load %arg2[%c3, %c0_7] : memref<8x128xf32, #tpu.memory_space<vmem>>, vector<1x1xf32>
    %c4 = arith.constant 4 : index
    %c0_8 = arith.constant 0 : index
    %9 = vector.load %arg2[%c4, %c0_8] : memref<8x128xf32, #tpu.memory_space<vmem>>, vector<1x1xf32>
    %c5 = arith.constant 5 : index
    %c0_9 = arith.constant 0 : index
    %10 = vector.load %arg2[%c5, %c0_9] : memref<8x128xf32, #tpu.memory_space<vmem>>, vector<1x10xf32>
    %c6 = arith.constant 6 : index
    %c0_10 = arith.constant 0 : index
    %11 = vector.load %arg2[%c6, %c0_10] : memref<8x128xf32, #tpu.memory_space<vmem>>, vector<1x10xf32>
    %cst_11 = arith.constant dense<0.000000e+00> : vector<16xf32>
    %12 = vector.multi_reduction <add>, %4, %cst_11 [0] : vector<16x16xf32> to vector<16xf32>
    %13 = vector.shape_cast %12 : vector<16xf32> to vector<1x16xf32>
    %cst_12 = arith.constant 1.600000e+01 : f32
    %14 = vector.broadcast %cst_12 : f32 to vector<1x16xf32>
    %15 = arith.divf %13, %14 : vector<1x16xf32>
    %16 = vector.broadcast %15 : vector<1x16xf32> to vector<16x16xf32>
    %17 = arith.subf %4, %16 : vector<16x16xf32>
    %18 = arith.mulf %17, %17 : vector<16x16xf32>
    %cst_13 = arith.constant dense<0.000000e+00> : vector<16xf32>
    %19 = vector.multi_reduction <add>, %18, %cst_13 [0] : vector<16x16xf32> to vector<16xf32>
    %20 = vector.shape_cast %19 : vector<16xf32> to vector<1x16xf32>
    %cst_14 = arith.constant 1.600000e+01 : f32
    %21 = vector.broadcast %cst_14 : f32 to vector<1x16xf32>
    %22 = arith.divf %20, %21 : vector<1x16xf32>
    %23 = vector.broadcast %15 : vector<1x16xf32> to vector<16x16xf32>
    %24 = arith.subf %4, %23 : vector<16x16xf32>
    %cst_15 = arith.constant 9.99999974E-6 : f32
    %25 = vector.broadcast %cst_15 : f32 to vector<1x16xf32>
    %26 = arith.addf %22, %25 : vector<1x16xf32>
    %27 = math.rsqrt %26 : vector<1x16xf32>
    %28 = vector.broadcast %27 : vector<1x16xf32> to vector<16x16xf32>
    %29 = arith.mulf %24, %28 : vector<16x16xf32>
    %30 = vector.broadcast %5 : vector<1x16xf32> to vector<16x16xf32>
    %31 = arith.mulf %29, %30 : vector<16x16xf32>
    %32 = vector.broadcast %6 : vector<1x16xf32> to vector<16x16xf32>
    %33 = arith.addf %31, %32 : vector<16x16xf32>
    %cst_16 = arith.constant 0.000000e+00 : f32
    %34 = vector.broadcast %cst_16 : f32 to vector<16x16xf32>
    %35 = arith.cmpf ogt, %33, %34 : vector<16x16xf32>
    %cst_17 = arith.constant 0.00999999977 : f32
    %36 = vector.broadcast %cst_17 : f32 to vector<16x16xf32>
    %37 = arith.mulf %36, %33 : vector<16x16xf32>
    %38 = arith.select %35, %33, %37 : vector<16x16xi1>, vector<16x16xf32>
    %39 = vector.broadcast %7 : vector<1x16xf32> to vector<16x16xf32>
    %40 = arith.mulf %38, %39 : vector<16x16xf32>
    %cst_18 = arith.constant dense<0.000000e+00> : vector<16xf32>
    %41 = vector.multi_reduction <add>, %40, %cst_18 [1] : vector<16x16xf32> to vector<16xf32>
    %42 = vector.shape_cast %41 : vector<16xf32> to vector<16x1xf32>
    %cst_19 = arith.constant dense<0.000000e+00> : vector<1xf32>
    %43 = vector.multi_reduction <add>, %42, %cst_19 [0] : vector<16x1xf32> to vector<1xf32>
    %44 = vector.shape_cast %43 : vector<1xf32> to vector<1x1xf32>
    %cst_20 = arith.constant 1.600000e+01 : f32
    %45 = vector.broadcast %cst_20 : f32 to vector<1x1xf32>
    %46 = arith.divf %44, %45 : vector<1x1xf32>
    %47 = vector.broadcast %46 : vector<1x1xf32> to vector<16x1xf32>
    %48 = arith.subf %42, %47 : vector<16x1xf32>
    %49 = arith.mulf %48, %48 : vector<16x1xf32>
    %cst_21 = arith.constant dense<0.000000e+00> : vector<1xf32>
    %50 = vector.multi_reduction <add>, %49, %cst_21 [0] : vector<16x1xf32> to vector<1xf32>
    %51 = vector.shape_cast %50 : vector<1xf32> to vector<1x1xf32>
    %cst_22 = arith.constant 1.600000e+01 : f32
    %52 = vector.broadcast %cst_22 : f32 to vector<1x1xf32>
    %53 = arith.divf %51, %52 : vector<1x1xf32>
    %54 = vector.broadcast %46 : vector<1x1xf32> to vector<16x1xf32>
    %55 = arith.subf %42, %54 : vector<16x1xf32>
    %cst_23 = arith.constant 9.99999974E-6 : f32
    %56 = vector.broadcast %cst_23 : f32 to vector<1x1xf32>
    %57 = arith.addf %53, %56 : vector<1x1xf32>
    %58 = math.rsqrt %57 : vector<1x1xf32>
    %59 = vector.broadcast %58 : vector<1x1xf32> to vector<16x1xf32>
    %60 = arith.mulf %55, %59 : vector<16x1xf32>
    %61 = vector.broadcast %8 : vector<1x1xf32> to vector<16x1xf32>
    %62 = arith.mulf %60, %61 : vector<16x1xf32>
    %63 = vector.broadcast %9 : vector<1x1xf32> to vector<16x1xf32>
    %64 = arith.addf %62, %63 : vector<16x1xf32>
    %cst_24 = arith.constant 0.000000e+00 : f32
    %65 = vector.broadcast %cst_24 : f32 to vector<16x1xf32>
    %66 = arith.cmpf ogt, %64, %65 : vector<16x1xf32>
    %cst_25 = arith.constant 0.00999999977 : f32
    %67 = vector.broadcast %cst_25 : f32 to vector<16x1xf32>
    %68 = arith.mulf %67, %64 : vector<16x1xf32>
    %69 = arith.select %66, %64, %68 : vector<16x1xi1>, vector<16x1xf32>
    %70 = vector.broadcast %69 : vector<16x1xf32> to vector<16x10xf32>
    %71 = vector.broadcast %10 : vector<1x10xf32> to vector<16x10xf32>
    %72 = arith.mulf %70, %71 : vector<16x10xf32>
    %73 = vector.broadcast %11 : vector<1x10xf32> to vector<16x10xf32>
    %74 = arith.addf %72, %73 : vector<16x10xf32>
    %c0_26 = arith.constant 0 : index
    %c0_27 = arith.constant 0 : index
    %75 = vector.load %arg3[%c0_26, %c0_27] : memref<16x10xf32, #tpu.memory_space<vmem>>, vector<16x10xf32>
    tpu.vector_store %arg3[%c0_26, %c0_27], %74 {strides = array<i32>} : memref<16x10xf32, #tpu.memory_space<vmem>>, vector<16x10xf32>,
    return
  }
}

</mosaic_0001>

<bundles_post_ra>
// kernel: tpu_custom_call.1
= control target key start
LH: loop header
LB: loop body
LE: loop exit
PB: predicated region body
PF: predicated region fallthrough
CT: control target
= control target key end

     0   :  { %s885_s0 = inlined_call_operand.vmem [shape: f32[16,784], index: 0, kind: input, shape index: {}]   ;;  %s886_s1 = inlined_call_operand.vmem [shape: f32[784,16], index: 1, kind: input, shape index: {}]   ;;  %s887_s2 = inlined_call_operand.vmem [shape: f32[8,128], index: 2, kind: input, shape index: {}]   ;;  %s888_s3 = inlined_call_operand.hbm [shape: f32[16,10], index: 3, kind: output, shape index: {}]  }
   0x1   :  { %v51_v0 = vld [vmem:[%s886_s1 + $0x70] sm:$0xff]  ;;  %v52_v1 = vld [vmem:[%s886_s1 + $0x78] sm:$0xff]  ;;  %v49_v11 = vld [vmem:[%s886_s1 + $0x60] sm:$0xff] }
   0x2   :  { %v67_v2 = vld [vmem:[%s886_s1 + $0xf0] sm:$0xff]  ;;  %v142_v3 = vpack.c.bf16 %v52_v1, %v51_v0  ;;  %v68_v4 = vld [vmem:[%s886_s1 + $0xf8] sm:$0xff]  ;;  %v50_v13 = vld [vmem:[%s886_s1 + $0x68] sm:$0xff] }
   0x3   :  { %v83_v5 = vld [vmem:[%s886_s1 + $0x170] sm:$0xff]  ;;  %v84_v6 = vld [vmem:[%s886_s1 + $0x178] sm:$0xff]  ;;  %v150_v7 = vpack.c.bf16 %v68_v4, %v67_v2  ;;  %v65_v14 = vld [vmem:[%s886_s1 + $0xe0] sm:$0xff]  ;;  %v141_v16 = vpack.c.bf16 %v50_v13, %v49_v11 }
   0x4   :  { %v158_v8 = vpack.c.bf16 %v84_v6, %v83_v5  ;;  %v99_v9 = vld [vmem:[%s886_s1 + $0x1f0] sm:$0xff]  ;;  %v100_v10 = vld [vmem:[%s886_s1 + $0x1f8] sm:$0xff]  ;;  %188 = vmatpush.bf16.msra.mxu0 %v142_v3  ;;  %v66_v15 = vld [vmem:[%s886_s1 + $0xe8] sm:$0xff] }
   0x5   :  { %v166_v12 = vpack.c.bf16 %v100_v10, %v99_v9  ;;  %202 = vmatpush.bf16.msra.mxu1 %v150_v7  ;;  %v149_v17 = vpack.c.bf16 %v66_v15, %v65_v14  ;;  %v81_v18 = vld [vmem:[%s886_s1 + $0x160] sm:$0xff]  ;;  %v82_v19 = vld [vmem:[%s886_s1 + $0x168] sm:$0xff]  ;;  %v47_v23 = vld [vmem:[%s886_s1 + $0x50] sm:$0xff] }
   0x6   :  { %216 = vmatpush.bf16.msra.mxu2 %v158_v8  ;;  %v97_v20 = vld [vmem:[%s886_s1 + $0x1e0] sm:$0xff]  ;;  %v157_v21 = vpack.c.bf16 %v82_v19, %v81_v18  ;;  %v98_v22 = vld [vmem:[%s886_s1 + $0x1e8] sm:$0xff]  ;;  %v48_v24 = vld [vmem:[%s886_s1 + $0x58] sm:$0xff] }
   0x7   :  { %230 = vmatpush.bf16.msra.mxu3 %v166_v12  ;;  %v165_v25 = vpack.c.bf16 %v98_v22, %v97_v20  ;;  %v63_v26 = vld [vmem:[%s886_s1 + $0xd0] sm:$0xff]  ;;  %v64_v27 = vld [vmem:[%s886_s1 + $0xd8] sm:$0xff]  ;;  %v140_v29 = vpack.c.bf16 %v48_v24, %v47_v23  ;;  %v45_v35 = vld [vmem:[%s886_s1 + $0x40] sm:$0xff] }
   0x8   :  { %v79_v28 = vld [vmem:[%s886_s1 + $0x150] sm:$0xff]  ;;  %189 = vmatpush.bf16.msra.mxu0 %v141_v16  ;;  %v80_v30 = vld [vmem:[%s886_s1 + $0x158] sm:$0xff]  ;;  %v148_v33 = vpack.c.bf16 %v64_v27, %v63_v26  ;;  %v46_v36 = vld [vmem:[%s886_s1 + $0x48] sm:$0xff] }
   0x9   :  { %v95_v31 = vld [vmem:[%s886_s1 + $0x1d0] sm:$0xff]  ;;  %v96_v32 = vld [vmem:[%s886_s1 + $0x1d8] sm:$0xff]  ;;  %203 = vmatpush.bf16.msra.mxu1 %v149_v17  ;;  %v156_v34 = vpack.c.bf16 %v80_v30, %v79_v28  ;;  %v61_v37 = vld [vmem:[%s886_s1 + $0xc0] sm:$0xff]  ;;  %v139_v44 = vpack.c.bf16 %v46_v36, %v45_v35 }
   0xa   :  { %217 = vmatpush.bf16.msra.mxu2 %v157_v21  ;;  %v164_v38 = vpack.c.bf16 %v96_v32, %v95_v31  ;;  %v62_v39 = vld [vmem:[%s886_s1 + $0xc8] sm:$0xff]  ;;  %v77_v40 = vld [vmem:[%s886_s1 + $0x140] sm:$0xff]  ;;  %v43_v47 = vld [vmem:[%s886_s1 + $0x30] sm:$0xff] }
   0xb   :  { %231 = vmatpush.bf16.msra.mxu3 %v165_v25  ;;  %v78_v41 = vld [vmem:[%s886_s1 + $0x148] sm:$0xff]  ;;  %v93_v42 = vld [vmem:[%s886_s1 + $0x1c0] sm:$0xff]  ;;  %v147_v45 = vpack.c.bf16 %v62_v39, %v61_v37  ;;  %v44_v48 = vld [vmem:[%s886_s1 + $0x38] sm:$0xff] }
   0xc   :  { %v94_v43 = vld [vmem:[%s886_s1 + $0x1c8] sm:$0xff]  ;;  %190 = vmatpush.bf16.msra.mxu0 %v140_v29  ;;  %v155_v46 = vpack.c.bf16 %v78_v41, %v77_v40  ;;  %v59_v49 = vld [vmem:[%s886_s1 + $0xb0] sm:$0xff]  ;;  %v60_v51 = vld [vmem:[%s886_s1 + $0xb8] sm:$0xff]  ;;  %v138_v56 = vpack.c.bf16 %v44_v48, %v43_v47 }
   0xd   :  { %204 = vmatpush.bf16.msra.mxu1 %v148_v33  ;;  %v163_v50 = vpack.c.bf16 %v94_v43, %v93_v42  ;;  %v75_v52 = vld [vmem:[%s886_s1 + $0x130] sm:$0xff]  ;;  %v76_v53 = vld [vmem:[%s886_s1 + $0x138] sm:$0xff]  ;;  %v146_v57 = vpack.c.bf16 %v60_v51, %v59_v49  ;;  %v41_v59 = vld [vmem:[%s886_s1 + $0x20] sm:$0xff] }
   0xe   :  { %218 = vmatpush.bf16.msra.mxu2 %v156_v34  ;;  %v91_v54 = vld [vmem:[%s886_s1 + $0x1b0] sm:$0xff]  ;;  %v92_v55 = vld [vmem:[%s886_s1 + $0x1b8] sm:$0xff]  ;;  %v154_v58 = vpack.c.bf16 %v76_v53, %v75_v52  ;;  %v42_v60 = vld [vmem:[%s886_s1 + $0x28] sm:$0xff] }
   0xf   :  { %232 = vmatpush.bf16.msra.mxu3 %v164_v38  ;;  %v57_v61 = vld [vmem:[%s886_s1 + $0xa0] sm:$0xff]  ;;  %v162_v62 = vpack.c.bf16 %v92_v55, %v91_v54  ;;  %v58_v63 = vld [vmem:[%s886_s1 + $0xa8] sm:$0xff]  ;;  %v137_v4 = vpack.c.bf16 %v42_v60, %v41_v59  ;;  %v39_v7 = vld [vmem:[%s886_s1 + $0x10] sm:$0xff] }
  0x10   :  { %191 = vmatpush.bf16.msra.mxu0 %v139_v44  ;;  %v73_v0 = vld [vmem:[%s886_s1 + $0x120] sm:$0xff]  ;;  %v74_v1 = vld [vmem:[%s886_s1 + $0x128] sm:$0xff]  ;;  %v145_v5 = vpack.c.bf16 %v58_v63, %v57_v61  ;;  %v40_v8 = vld [vmem:[%s886_s1 + $0x18] sm:$0xff] }
  0x11   :  { %205 = vmatpush.bf16.msra.mxu1 %v147_v45  ;;  %v89_v2 = vld [vmem:[%s886_s1 + $0x1a0] sm:$0xff]  ;;  %v90_v3 = vld [vmem:[%s886_s1 + $0x1a8] sm:$0xff]  ;;  %v153_v6 = vpack.c.bf16 %v74_v1, %v73_v0  ;;  %v55_v9 = vld [vmem:[%s886_s1 + $0x90] sm:$0xff]  ;;  %v136_v16 = vpack.c.bf16 %v40_v8, %v39_v7 }
  0x12   :  { %219 = vmatpush.bf16.msra.mxu2 %v155_v46  ;;  %v161_v10 = vpack.c.bf16 %v90_v3, %v89_v2  ;;  %v56_v11 = vld [vmem:[%s886_s1 + $0x98] sm:$0xff]  ;;  %v71_v12 = vld [vmem:[%s886_s1 + $0x110] sm:$0xff]  ;;  %v37_v17 = vld [vmem:[%s886_s1] sm:$0xff] }
  0x13   :  { %233 = vmatpush.bf16.msra.mxu3 %v163_v50  ;;  %v72_v13 = vld [vmem:[%s886_s1 + $0x118] sm:$0xff]  ;;  %v87_v14 = vld [vmem:[%s886_s1 + $0x190] sm:$0xff]  ;;  %v38_v18 = vld [vmem:[%s886_s1 + $0x8] sm:$0xff]  ;;  %v144_v20 = vpack.c.bf16 %v56_v11, %v55_v9 }
  0x14   :  { %192 = vmatpush.bf16.msra.mxu0 %v138_v56  ;;  %v88_v15 = vld [vmem:[%s886_s1 + $0x198] sm:$0xff]  ;;  %v53_v19 = vld [vmem:[%s886_s1 + $0x80] sm:$0xff]  ;;  %v152_v21 = vpack.c.bf16 %v72_v13, %v71_v12  ;;  %v54_v22 = vld [vmem:[%s886_s1 + $0x88] sm:$0xff]  ;;  %v135_v32 = vpack.c.bf16 %v38_v18, %v37_v17 }
  0x15   :  { %206 = vmatpush.bf16.msra.mxu1 %v146_v57  ;;  %v69_v23 = vld [vmem:[%s886_s1 + $0x100] sm:$0xff]  ;;  %v70_v24 = vld [vmem:[%s886_s1 + $0x108] sm:$0xff]  ;;  %v160_v25 = vpack.c.bf16 %v88_v15, %v87_v14  ;;  %v115_v26 = vld [vmem:[%s886_s1 + $0x270] sm:$0xff]  ;;  %v143_v36 = vpack.c.bf16 %v54_v22, %v53_v19 }
  0x16   :  { %220 = vmatpush.bf16.msra.mxu2 %v154_v58  ;;  %v116_v27 = vld [vmem:[%s886_s1 + $0x278] sm:$0xff]  ;;  %v131_v28 = vld [vmem:[%s886_s1 + $0x2f0] sm:$0xff]  ;;  %v85_v30 = vld [vmem:[%s886_s1 + $0x180] sm:$0xff]  ;;  %v151_v37 = vpack.c.bf16 %v70_v24, %v69_v23 }
  0x17   :  { %234 = vmatpush.bf16.msra.mxu3 %v162_v62  ;;  %v132_v29 = vld [vmem:[%s886_s1 + $0x2f8] sm:$0xff]  ;;  %v86_v31 = vld [vmem:[%s886_s1 + $0x188] sm:$0xff]  ;;  %v18_v33 = vld [vmem:[%s885_s0 + $0x10] sm:$0xff]  ;;  %v174_v41 = vpack.c.bf16 %v116_v27, %v115_v26 }
  0x18   :  { %193 = vmatpush.bf16.msra.mxu0 %v137_v4  ;;  %v16_v34 = vld [vmem:[%s885_s0] sm:$0xff]  ;;  %v23_v35 = vld [vmem:[%s885_s0 + $0x38] sm:$0xff]  ;;  %v25_v38 = vld [vmem:[%s885_s0 + $0x48] sm:$0xff]  ;;  %v182_v42 = vpack.c.bf16 %v132_v29, %v131_v28  ;;  %v159_v46 = vpack.c.bf16 %v86_v31, %v85_v30 }
  0x19   :  { %207 = vmatpush.bf16.msra.mxu1 %v145_v5  ;;  %v17_v39 = vld [vmem:[%s885_s0 + $0x8] sm:$0xff]  ;;  %v24_v40 = vld [vmem:[%s885_s0 + $0x40] sm:$0xff]  ;;  %v30_v50 = vpack.c.bf16 %v23_v35, %v16_v34  ;;  %v32_v51 = vpack.c.bf16 %v25_v38, %v18_v33  ;;  %v19_v52 = vld [vmem:[%s885_s0 + $0x18] sm:$0xff] }
  0x1a   :  { %221 = vmatpush.bf16.msra.mxu2 %v153_v6  ;;  %v113_v43 = vld [vmem:[%s886_s1 + $0x260] sm:$0xff]  ;;  %v134_v45 = vld [vmem:[%s886_s1 + $0x308] sm:$0xff]  ;;  %v26_v53 = vld [vmem:[%s885_s0 + $0x50] sm:$0xff]  ;;  %v31_v54 = vpack.c.bf16 %v24_v40, %v17_v39 }
  0x1b   :  { %235 = vmatpush.bf16.msra.mxu3 %v161_v10  ;;  %v133_v44 = vld [vmem:[%s886_s1 + $0x300] sm:$0xff]  ;;  %v114_v47 = vld [vmem:[%s886_s1 + $0x268] sm:$0xff]  ;;  %v111_v58 = vld [vmem:[%s886_s1 + $0x250] sm:$0xff]  ;;  %v33_v59 = vpack.c.bf16 %v26_v53, %v19_v52 }
  0x1c   :  { %194 = vmatpush.bf16.msra.mxu0 %v136_v16  ;;  %v129_v48 = vld [vmem:[%s886_s1 + $0x2e0] sm:$0xff]  ;;  %v130_v49 = vld [vmem:[%s886_s1 + $0x2e8] sm:$0xff]  ;;  %v183_v55 = vpack.c.bf16 %v134_v45, %v133_v44  ;;  %v173_v56 = vpack.c.bf16 %v114_v47, %v113_v43  ;;  %v112_v60 = vld [vmem:[%s886_s1 + $0x258] sm:$0xff] }
  0x1d   :  { %208 = vmatpush.bf16.msra.mxu1 %v144_v20  ;;  %v181_v57 = vpack.c.bf16 %v130_v49, %v129_v48  ;;  %v127_v61 = vld [vmem:[%s886_s1 + $0x2d0] sm:$0xff]  ;;  %v128_v62 = vld [vmem:[%s886_s1 + $0x2d8] sm:$0xff]  ;;  %v109_v63 = vld [vmem:[%s886_s1 + $0x240] sm:$0xff]  ;;  %v172_v2 = vpack.c.bf16 %v112_v60, %v111_v58 }
  0x1e   :  { %222 = vmatpush.bf16.msra.mxu2 %v152_v21  ;;  %v110_v0 = vld [vmem:[%s886_s1 + $0x248] sm:$0xff]  ;;  %v125_v1 = vld [vmem:[%s886_s1 + $0x2c0] sm:$0xff]  ;;  %v180_v3 = vpack.c.bf16 %v128_v62, %v127_v61 }
  0x1f   :  { %236 = vmatpush.bf16.msra.mxu3 %v160_v25  ;;  %v126_v4 = vld [vmem:[%s886_s1 + $0x2c8] sm:$0xff] }
  0x20   :  { %195 = vmatpush.bf16.msra.mxu0 %v135_v32 }
  0x21   :  { %209 = vmatpush.bf16.msra.mxu1 %v143_v36 }
  0x22   :  { %223 = vmatpush.bf16.msra.mxu2 %v151_v37 }
  0x23   :  { %237 = vmatpush.bf16.msra.mxu3 %v159_v46  ;;  %196 = vmatmul.bf16.vlgmr.msra.gmra.mxu0 %v30_v50 }
  0x24   :  { %244 = vmatpush.bf16.msrb.mxu0 %v174_v41  ;;  %210 = vmatmul.bf16.vlgmr.msra.gmra.mxu1 %v31_v54 }
  0x25   :  { %258 = vmatpush.bf16.msrb.mxu1 %v182_v42  ;;  %224 = vmatmul.bf16.vlgmr.msra.gmra.mxu2 %v32_v51 }
  0x26   :  { %279 = vmatpush.bf16.msrb.mxu2 %v183_v55  ;;  %238 = vmatmul.bf16.vlgmr.msra.gmra.mxu3 %v33_v59 }
  0x28   :  { %245 = vmatpush.bf16.msrb.mxu0 %v173_v56 }
  0x29   :  { %259 = vmatpush.bf16.msrb.mxu1 %v181_v57 }
  0x2a   :  { %8 = vsyncpa [#allocation3], 0  ;;  %v171_v5 = vpack.c.bf16 %v110_v0, %v109_v63  ;;  %v179_v6 = vpack.c.bf16 %v126_v4, %v125_v1  ;;  %v107_v7 = vld [vmem:[%s886_s1 + $0x230] sm:$0xff]  ;;  %v108_v8 = vld [vmem:[%s886_s1 + $0x238] sm:$0xff]  ;;  %vm184_vm0 = vcmask 130048   ;;  %v487_v54 = vmov 16.0  }
  0x2b   :  { %v123_v9 = vld [vmem:[%s886_s1 + $0x2b0] sm:$0xff]  ;;  %v124_v10 = vld [vmem:[%s886_s1 + $0x2b8] sm:$0xff]  ;;  %v29_v12 = vld [vmem:[%s885_s0 + $0x68] sm:$0xff]  ;;  %v170_v13 = vpack.c.bf16 %v108_v8, %v107_v7  ;;  %455 = vrcp.f32 %v487_v54  ;;  %vm419_vm12 = vcmask 80896   ;;  %s489_s5 = smov [#allocation2]   ;;  %s428_s9 = sshll.u32 %s888_s3, 4  ;;  %s429_s9 = int_to_ptr.hbm [resolvable:$true] %s428_s9 }
  0x2c   :  { %246 = vmatpush.bf16.msrb.mxu0 %v172_v2  ;;  %v22_v11 = vld [vmem:[%s885_s0 + $0x30] sm:$0xff]  ;;  %v178_v14 = vpack.c.bf16 %v124_v10, %v123_v9  ;;  %v105_v15 = vld [vmem:[%s886_s1 + $0x220] sm:$0xff]  ;;  %v106_v16 = vld [vmem:[%s886_s1 + $0x228] sm:$0xff]  ;;  %s426_s6 = sshll.u32 %s489_s5, 4  ;;  %s490_s10 = smov 128   ;;  %s427_s6 = int_to_ptr.vmem [resolvable:$true] %s426_s6 }
  0x2d   :  { %260 = vmatpush.bf16.msrb.mxu1 %v180_v3  ;;  %v121_v17 = vld [vmem:[%s886_s1 + $0x2a0] sm:$0xff]  ;;  %v122_v18 = vld [vmem:[%s886_s1 + $0x2a8] sm:$0xff]  ;;  %v36_v19 = vpack.c.bf16 %v29_v12, %v22_v11  ;;  %v169_v20 = vpack.c.bf16 %v106_v16, %v105_v15  ;;  %v103_v22 = vld [vmem:[%s886_s1 + $0x210] sm:$0xff]  ;;  %s491_s11 = smov 8  }
  0x2e   :  { %v177_v21 = vpack.c.bf16 %v122_v18, %v121_v17  ;;  %v104_v23 = vld [vmem:[%s886_s1 + $0x218] sm:$0xff]  ;;  %v119_v24 = vld [vmem:[%s886_s1 + $0x290] sm:$0xff]  ;;  %v101_v28 = vld [vmem:[%s886_s1 + $0x200] sm:$0xff] }
  0x2f   :  { %v120_v25 = vld [vmem:[%s886_s1 + $0x298] sm:$0xff]  ;;  %v168_v26 = vpack.c.bf16 %v104_v23, %v103_v22  ;;  %v102_v29 = vld [vmem:[%s886_s1 + $0x208] sm:$0xff]  ;;  %v117_v30 = vld [vmem:[%s886_s1 + $0x280] sm:$0xff] }
  0x30   :  { %247 = vmatpush.bf16.msrb.mxu0 %v171_v5  ;;  %v176_v27 = vpack.c.bf16 %v120_v25, %v119_v24  ;;  %v118_v31 = vld [vmem:[%s886_s1 + $0x288] sm:$0xff]  ;;  %v20_v32 = vld [vmem:[%s885_s0 + $0x20] sm:$0xff]  ;;  %v167_v33 = vpack.c.bf16 %v102_v29, %v101_v28  ;;  %v27_v35 = vld [vmem:[%s885_s0 + $0x58] sm:$0xff] }
  0x31   :  { %261 = vmatpush.bf16.msrb.mxu1 %v179_v6  ;;  %v175_v34 = vpack.c.bf16 %v118_v31, %v117_v30  ;;  %v21_v36 = vld [vmem:[%s885_s0 + $0x28] sm:$0xff]  ;;  %v28_v37 = vld [vmem:[%s885_s0 + $0x60] sm:$0xff]  ;;  %v34_v38 = vpack.c.bf16 %v27_v35, %v20_v32  ;;  %v456_v60 = vpop.eup %455 }
  0x32   :  { %v35_v39 = vpack.c.bf16 %v28_v37, %v21_v36  ;;  %v303_v2 = vmul.f32 16.0, %v456_v60  ;;  %vm307_vm1 = vweird.f32 %v456_v60 }
  0x34   :  { %248 = vmatpush.bf16.msrb.mxu0 %v170_v13  ;;  %v304_v7 = vsub.f32 1.0, %v303_v2 }
  0x35   :  { %262 = vmatpush.bf16.msrb.mxu1 %v178_v14  ;;  %440 = vmatmul.msk.bf16.vlgmr.msrb.gmra.mxu2 %vm184_vm0, %v36_v19 }
  0x36   :  { %v305_v10 = vmul.f32 %v456_v60, %v304_v7 }
  0x38   :  { %249 = vmatpush.bf16.msrb.mxu0 %v169_v20  ;;  %v306_v13 = vadd.f32 %v456_v60, %v305_v10 }
  0x39   :  { %263 = vmatpush.bf16.msrb.mxu1 %v177_v21 }
  0x3a   :  { %v851_v16 = vsel %vm307_vm1, %v456_v60, %v306_v13 }
  0x3c   :  { %250 = vmatpush.bf16.msrb.mxu0 %v168_v26 }
  0x3d   :  { %264 = vmatpush.bf16.msrb.mxu1 %v176_v27 }
  0x40   :  { %251 = vmatpush.bf16.msrb.mxu0 %v167_v33 }
  0x41   :  { %265 = vmatpush.bf16.msrb.mxu1 %v175_v34 }
  0x43   :  { %252 = vmatmul.bf16.vlgmr.msrb.gmra.mxu0 %v34_v38 }
  0x44   :  { %266 = vmatmul.bf16.vlgmr.msrb.gmra.mxu1 %v35_v39 }
  0xa0   :  { %v197_v40 = vpop.f32.mrf.mxu0 }
  0xa1   :  { %v211_v41 = vpop.f32.mrf.mxu1 }
  0xa2   :  { %v212_v45 = vadd.f32 %v211_v41, %v197_v40  ;;  %v448_v40 = vld [vmem:[%s887_s2] ss:$0 sm:$0xff] }
  0xa8   :  { %v225_v42 = vpop.f32.mrf.mxu2  ;;  %v199_v43 = vpop.f32.mrf.mxu0 }
  0xa9   :  { %v213_v44 = vpop.f32.mrf.mxu1  ;;  %v239_v46 = vpop.f32.mrf.mxu3  ;;  %v226_v48 = vadd.f32 %v225_v42, %v212_v45 }
  0xaa   :  { %v214_v49 = vadd.f32 %v213_v44, %v199_v43  ;;  %v449_v44 = vld [vmem:[%s887_s2 + $0x1] ss:$0 sm:$0xff] }
  0xab   :  { %v240_v52 = vadd.f32 %v239_v46, %v226_v48 }
  0xb0   :  { %v227_v47 = vpop.f32.mrf.mxu2 }
  0xb1   :  { %v228_v55 = vadd.f32 %v227_v47, %v214_v49  ;;  %v241_v57 = vpop.f32.mrf.mxu3  ;;  %v450_v49 = vld [vmem:[%s887_s2 + $0x2] ss:$0 sm:$0xff] }
  0xb3   :  { %v242_v58 = vadd.f32 %v241_v57, %v228_v55 }
  0xb8   :  { %v281_v53 = vpop.f32.mrf.mxu2 }
  0xc0   :  { %v253_v50 = vpop.f32.mrf.mxu0  ;;  %v283_v3 = vpop.f32.mrf.mxu2 }
  0xc1   :  { %v267_v51 = vpop.f32.mrf.mxu1  ;;  %v254_v56 = vadd.f32 %v253_v50, %v240_v52 }
  0xc3   :  { %v268_v59 = vadd.f32 %v267_v51, %v254_v56 }
  0xc5   :  { %v282_v0 = vadd.f32 %v281_v53, %v268_v59 }
  0xc7   :  { %v293_v5 = vsel %vm184_vm0, %v282_v0, 0.0 }
  0xc8   :  { %v255_v61 = vpop.f32.mrf.mxu0 }
  0xc9   :  { %v256_v62 = vadd.f32 %v255_v61, %v242_v58  ;;  %v269_v63 = vpop.f32.mrf.mxu1 }
  0xcb   :  { %v270_v1 = vadd.f32 %v269_v63, %v256_v62 }
  0xcd   :  { %v284_v4 = vadd.f32 %v283_v3, %v270_v1 }
  0xcf   :  { %v294_v6 = vsel %vm184_vm0, %v284_v4, 0.0 }
  0xd0   :  { %v295_v8 = vadd.f32 %v294_v6, %v293_v5 }
  0xd2   :  { %v296_v9 = vrot.slane %v295_v8, 4 }
  0xd4   :  { %v297_v11 = vadd.f32 %v296_v9, %v295_v8 }
  0xd6   :  { %v298_v12 = vrot.slane %v297_v11, 2 }
  0xd8   :  { %v299_v14 = vadd.f32 %v298_v12, %v297_v11  ;;  %v488_v12 = vmov 0  }
  0xd9   :  { %446 = vset.pattern.permute.xlu1 %v488_v12  ;;  %447 = vset.pattern.permute.xlu0 %v488_v12 }
  0xda   :  { %v300_v15 = vrot.slane %v299_v14, 1 }
  0xdc   :  { %v301_v17 = vadd.f32 %v300_v15, %v299_v14 }
  0xde   :  { %v309_v18 = vmul.f32 %v851_v16, %v301_v17 }
  0xe0   :  { %v310_v19 = vsub.f32 %v282_v0, %v309_v18  ;;  %v311_v20 = vsub.f32 %v284_v4, %v309_v18 }
  0xe2   :  { %v312_v21 = vmul.f32 %v310_v19, %v310_v19  ;;  %v313_v22 = vmul.f32 %v311_v20, %v311_v20 }
  0xe4   :  { %v314_v23 = vsel %vm184_vm0, %v312_v21, 0.0  ;;  %v315_v24 = vsel %vm184_vm0, %v313_v22, 0.0 }
  0xe5   :  { %v316_v25 = vadd.f32 %v315_v24, %v314_v23 }
  0xe7   :  { %v317_v26 = vrot.slane %v316_v25, 4 }
  0xe9   :  { %v318_v27 = vadd.f32 %v317_v26, %v316_v25  ;;  %v451_v25 = vld [vmem:[%s887_s2 + $0x3] ss:$0 sm:$0xff] }
  0xeb   :  { %v319_v28 = vrot.slane %v318_v27, 2 }
  0xed   :  { %v320_v29 = vadd.f32 %v319_v28, %v318_v27 }
  0xef   :  { %v321_v30 = vrot.slane %v320_v29, 1 }
  0xf1   :  { %v322_v31 = vadd.f32 %v321_v30, %v320_v29 }
  0xf3   :  { %v323_v32 = vmul.f32 %v322_v31, %v851_v16 }
  0xf5   :  { %v324_v33 = vadd.f32 1e-05, %v323_v32 }
  0xf7   :  { %457 = vrsqrt.f32 %v324_v33  ;;  %vm331_vm3 = vweird.f32 %v324_v33 }
  0xfd   :  { %v458_v34 = vpop.eup %457 }
  0xfe   :  { %v326_v35 = vmul.f32 %v458_v34, %v324_v33  ;;  %vm332_vm2 = vweird.f32 %v458_v34 }
  0xff   :  { %vm333_vm4 = vmor %vm331_vm3, %vm332_vm2 }
 0x100   :  { %v327_v36 = vmul.f32 %v458_v34, %v326_v35 }
 0x102   :  { %v328_v37 = vmul.f32 0.5, %v327_v36 }
 0x104   :  { %v329_v38 = vsub.f32 1.5, %v328_v37  ;;  %v453_v37 = vld [vmem:[%s887_s2 + $0x5] ss:$0 sm:$0xff] }
 0x106   :  { %v330_v39 = vmul.f32 %v458_v34, %v329_v38  ;;  %v454_v38 = vld [vmem:[%s887_s2 + $0x6] ss:$0 sm:$0xff] }
 0x108   :  { %v334_v41 = vsel %vm333_vm4, %v458_v34, %v330_v39 }
 0x109   :  { %v335_v42 = vmul.f32 %v334_v41, %v310_v19  ;;  %v336_v43 = vmul.f32 %v334_v41, %v311_v20 }
 0x10b   :  { %v339_v45 = vmul.f32 %v448_v40, %v336_v43  ;;  %v338_v46 = vmul.f32 %v448_v40, %v335_v42 }
 0x10d   :  { %v341_v47 = vadd.f32 %v449_v44, %v338_v46  ;;  %v342_v48 = vadd.f32 %v449_v44, %v339_v45 }
 0x10f   :  { %vm343_vm5 = vcmp.gt.f32.partialorder %v341_v47, 0.0  ;;  %v345_v50 = vmul.f32 0.01, %v341_v47  ;;  %v346_v52 = vmul.f32 0.01, %v342_v48  ;;  %vm344_vm6 = vcmp.gt.f32.partialorder %v342_v48, 0.0 }
 0x111   :  { %v347_v51 = vsel %vm343_vm5, %v341_v47, %v345_v50  ;;  %v348_v55 = vsel %vm344_vm6, %v342_v48, %v346_v52 }
 0x112   :  { %v350_v53 = vmul.f32 %v450_v49, %v347_v51  ;;  %v351_v56 = vmul.f32 %v450_v49, %v348_v55 }
 0x114   :  { %v352_v54 = vsel %vm184_vm0, %v350_v53, 0.0  ;;  %v355_v57 = vsel %vm184_vm0, %v351_v56, 0.0 }
 0x115   :  { %353 = vadd.xlane.f32.xlu0 %v352_v54 }
 0x11d   :  { %356 = vadd.xlane.f32.xlu0 %v355_v57 }
 0x188   :  { %v354_v58 = vpop.xlane.xlu0 %353 }
 0x190   :  { %v357_v59 = vpop.xlane.xlu0 %356 }
 0x191   :  { %v358_v60 = vadd.f32 %v357_v59, %v354_v58 }
 0x193   :  { %v359_v61 = vrot.slane %v358_v60, 4 }
 0x195   :  { %v360_v62 = vadd.f32 %v359_v61, %v358_v60 }
 0x197   :  { %v361_v63 = vrot.slane %v360_v62, 2 }
 0x199   :  { %v362_v0 = vadd.f32 %v361_v63, %v360_v62 }
 0x19b   :  { %v363_v1 = vrot.slane %v362_v0, 1 }
 0x19d   :  { %v364_v2 = vadd.f32 %v363_v1, %v362_v0 }
 0x19f   :  { %v365_v3 = vmul.f32 %v364_v2, %v851_v16 }
 0x1a1   :  { %v366_v4 = vsub.f32 %v354_v58, %v365_v3  ;;  %v367_v5 = vsub.f32 %v357_v59, %v365_v3 }
 0x1a3   :  { %v368_v6 = vmul.f32 %v366_v4, %v366_v4  ;;  %v369_v7 = vmul.f32 %v367_v5, %v367_v5 }
 0x1a5   :  { %v370_v8 = vadd.f32 %v369_v7, %v368_v6 }
 0x1a7   :  { %v371_v9 = vrot.slane %v370_v8, 4 }
 0x1a9   :  { %v372_v10 = vadd.f32 %v371_v9, %v370_v8 }
 0x1ab   :  { %v373_v11 = vrot.slane %v372_v10, 2 }
 0x1ad   :  { %v374_v13 = vadd.f32 %v373_v11, %v372_v10 }
 0x1af   :  { %v375_v14 = vrot.slane %v374_v13, 1 }
 0x1b1   :  { %v376_v15 = vadd.f32 %v375_v14, %v374_v13 }
 0x1b3   :  { %v377_v17 = vmul.f32 %v376_v15, %v851_v16  ;;  %v452_v16 = vld [vmem:[%s887_s2 + $0x4] ss:$0 sm:$0xff] }
 0x1b5   :  { %v378_v18 = vadd.f32 1e-05, %v377_v17 }
 0x1b7   :  { %459 = vrsqrt.f32 %v378_v18  ;;  %vm385_vm8 = vweird.f32 %v378_v18 }
 0x1bd   :  { %v460_v19 = vpop.eup %459 }
 0x1be   :  { %v380_v20 = vmul.f32 %v460_v19, %v378_v18  ;;  %vm386_vm7 = vweird.f32 %v460_v19 }
 0x1bf   :  { %vm387_vm9 = vmor %vm385_vm8, %vm386_vm7 }
 0x1c0   :  { %v381_v21 = vmul.f32 %v460_v19, %v380_v20 }
 0x1c2   :  { %v382_v22 = vmul.f32 0.5, %v381_v21 }
 0x1c4   :  { %v383_v23 = vsub.f32 1.5, %v382_v22 }
 0x1c6   :  { %v384_v24 = vmul.f32 %v460_v19, %v383_v23 }
 0x1c8   :  { %v388_v26 = vsel %vm387_vm9, %v460_v19, %v384_v24 }
 0x1c9   :  { %v389_v27 = vmul.f32 %v388_v26, %v366_v4  ;;  %v390_v28 = vmul.f32 %v388_v26, %v367_v5 }
 0x1cb   :  { %v392_v29 = vmul.f32 %v451_v25, %v389_v27  ;;  %v393_v30 = vmul.f32 %v451_v25, %v390_v28 }
 0x1cd   :  { %v395_v31 = vadd.f32 %v452_v16, %v392_v29  ;;  %v396_v34 = vadd.f32 %v452_v16, %v393_v30 }
 0x1cf   :  { %vm397_vm10 = vcmp.gt.f32.partialorder %v395_v31, 0.0  ;;  %v399_v32 = vmul.f32 0.01, %v395_v31  ;;  %v400_v35 = vmul.f32 0.01, %v396_v34  ;;  %vm398_vm11 = vcmp.gt.f32.partialorder %v396_v34, 0.0 }
 0x1d1   :  { %v401_v33 = vsel %vm397_vm10, %v395_v31, %v399_v32  ;;  %v402_v36 = vsel %vm398_vm11, %v396_v34, %v400_v35 }
 0x1d2   :  { %405 = vperm.xlu1 %446, %v401_v33  }
 0x1da   :  { %410 = vperm.xlu1 %446, %v402_v36  }
 0x244   :  { %v406_v39 = vpop.permute.xlu1 %405 }
 0x245   :  { %v414_v40 = vmul.f32 %v453_v37, %v406_v39 }
 0x247   :  { %v417_v41 = vadd.f32 %v454_v38, %v414_v40 }
 0x249   :  { %420 = vst.msk [vmem:[#allocation2] sm:$0xff] %vm419_vm12, %v417_v41 }
 0x24c   :  { %v411_v42 = vpop.permute.xlu1 %410 }
 0x24d   :  { %v415_v43 = vmul.f32 %v453_v37, %v411_v42 }
 0x24f   :  { %v418_v44 = vadd.f32 %v454_v38, %v415_v43 }
 0x251   :  { %421 = vst.msk [vmem:[#allocation2 + $0x8] sm:$0xff] %vm419_vm12, %v418_v44 }
 0x252   :  { %434 = dma.vmem_to_hbm [thread:$0]  %s427_s6, 256, %s429_s9, [#allocation3], %s490_s10, %s490_s10, %s491_s11  }
 0x253   :  { %485 = dma.done.wait [#allocation3], 256  }
 0x254   :  { %486 = vsyncadd [#allocation3], 4294967040 }
 0x255   :  { %439 = vsyncpa [#allocation3], 1 }

</bundles_post_ra>
